<compile_context>
chip_gen: v6e
topology: v6e:2x2x1
jax: 0.10.0
libtpu: 0.0.40
codegen_flags: <defaults>
</compile_context>

<pallas_src>
from functools import partial

import jax
import jax.numpy as jnp
from jax.experimental import pallas as pl
from jax.experimental.pallas import tpu as pltpu

LANE = 128


def _round_up(x, m):
    return (x + m - 1) // m * m


def rgcn_layer_kernel(a_ref, xs_ref, w_ref, dinv_ref, b_ref, o_ref, acc_ref,
                      *, apply_tanh):
    """One HeteroGraphConv layer, grid = (row_tiles, relations).

    a_ref   : Ref[1, TM, Np]   int8   raw 0/1 adjacency row-slab (relation r)
    xs_ref  : Ref[1, Np, Fin]  bf16   X pre-scaled by d_src^-1/2 for relation r
    w_ref   : Ref[1, Fin, Fout] bf16  per-relation weight
    dinv_ref: Ref[1, TM, 1]    f32    d_dst^-1/2 for this row slab, relation r
    b_ref   : Ref[1, Fout]     f32    hoisted bias  sum_r b_r
    o_ref   : Ref[TM, Fout]    f32    output row slab
    acc_ref : VMEM scratch [TM, Fout] f32 accumulator over relations
    """
    r = pl.program_id(1)

    @pl.when(r == 0)
    def _():
        acc_ref[...] = jnp.zeros_like(acc_ref)

    # widen the 1-byte adjacency only at point of use (exact for 0/1)
    a = a_ref[0].astype(jnp.float32).astype(jnp.bfloat16)          # [TM, Np]
    ax = jnp.dot(a, xs_ref[0], preferred_element_type=jnp.float32)  # [TM, Fin]
    msg = jnp.dot(ax.astype(jnp.bfloat16), w_ref[0],
                  preferred_element_type=jnp.float32)                # [TM, Fout]
    acc_ref[...] += dinv_ref[0] * msg        # destination-side norm, f32

    @pl.when(r == pl.num_programs(1) - 1)
    def _():
        out = acc_ref[...] + b_ref[...]
        if apply_tanh:
            out = jnp.tanh(out)
        o_ref[...] = out.astype(o_ref.dtype)


def _graph_conv_layer(adj_i8, xs_bf, w_bf, dinv, b_sum, *, apply_tanh, tm):
    """sum_r  d_dst_r^-1/2 * (A_r @ Xs_r @ W_r) + b_sum  (optionally tanh'd)."""
    R, n_p, _ = adj_i8.shape
    fin_p = xs_bf.shape[2]
    fout_p = w_bf.shape[2]

    kernel = partial(rgcn_layer_kernel, apply_tanh=apply_tanh)
    return pl.pallas_call(
        kernel,
        out_shape=jax.ShapeDtypeStruct((n_p, fout_p), jnp.float32),
        grid_spec=pltpu.PrefetchScalarGridSpec(
            num_scalar_prefetch=0,
            grid=(n_p // tm, R),
            in_specs=[
                pl.BlockSpec((1, tm, n_p), lambda i, r: (r, i, 0)),      # A
                pl.BlockSpec((1, n_p, fin_p), lambda i, r: (r, 0, 0)),   # Xs
                pl.BlockSpec((1, fin_p, fout_p), lambda i, r: (r, 0, 0)),# W
                pl.BlockSpec((1, tm, 1), lambda i, r: (r, i, 0)),        # dinv
                pl.BlockSpec((1, fout_p), lambda i, r: (0, 0)),          # bias
            ],
            out_specs=pl.BlockSpec((tm, fout_p), lambda i, r: (i, 0)),
            scratch_shapes=[pltpu.VMEM((tm, fout_p), jnp.float32)],
        ),
        compiler_params=pltpu.CompilerParams(
            dimension_semantics=("parallel", "arbitrary"),
            vmem_limit_bytes=32 * 1024 * 1024,
        ),
    )(adj_i8, xs_bf, w_bf, dinv, b_sum)


@jax.jit
def rgcn_forward(adj1, adj2, emb, w1, b1, w2, b2):
    """adj*: [R,N,N] {0,1}; emb: [N,in]; w1: [R,in,hid]; b1: [R,hid];
    w2: [R,hid,out]; b2: [R,out].  Returns [N,out] f32."""
    R, N, _ = adj1.shape
    in_f, hid_f = w1.shape[1], w1.shape[2]
    out_f = w2.shape[2]

    n_p = _round_up(N, LANE)
    in_p, hid_p, out_p = (_round_up(in_f, LANE), _round_up(hid_f, LANE),
                          _round_up(out_f, LANE))
    tm = 256 if n_p % 256 == 0 else 128      # halve on v7x for big N (TODO above)

    def prep_adj(adj):
        # degrees over REAL nodes only (before padding), clamped to >= 1
        dinv = jax.lax.rsqrt(jnp.maximum(adj.sum(axis=2), 1.0))   # [R,N] dst
        sinv = jax.lax.rsqrt(jnp.maximum(adj.sum(axis=1), 1.0))   # [R,N] src
        a_i8 = jnp.pad(adj, ((0, 0), (0, n_p - N), (0, n_p - N))).astype(jnp.int8)
        dinv = jnp.pad(dinv, ((0, 0), (0, n_p - N)))[..., None]   # [R,n_p,1]
        sinv = jnp.pad(sinv, ((0, 0), (0, n_p - N)))              # [R,n_p]
        return a_i8, dinv, sinv

    a1_i8, dinv1, sinv1 = prep_adj(adj1)
    a2_i8, dinv2, sinv2 = prep_adj(adj2)

    # layer 1 inputs: fold src-norm into X rows (per relation), cast to bf16
    x0 = jnp.pad(emb.astype(jnp.float32), ((0, n_p - N), (0, in_p - in_f)))
    xs1 = (x0[None] * sinv1[:, :, None]).astype(jnp.bfloat16)     # [R,n_p,in_p]
    w1p = jnp.pad(w1.astype(jnp.bfloat16),
                  ((0, 0), (0, in_p - in_f), (0, hid_p - hid_f)))
    b1s = jnp.pad(b1.astype(jnp.float32).sum(axis=0, keepdims=True),
                  ((0, 0), (0, hid_p - hid_f)))                   # [1,hid_p]

    h = _graph_conv_layer(a1_i8, xs1, w1p, dinv1, b1s, apply_tanh=True, tm=tm)

    # layer 2 inputs
    xs2 = (h[None] * sinv2[:, :, None]).astype(jnp.bfloat16)      # [R,n_p,hid_p]
    w2p = jnp.pad(w2.astype(jnp.bfloat16),
                  ((0, 0), (0, hid_p - hid_f), (0, out_p - out_f)))
    b2s = jnp.pad(b2.astype(jnp.float32).sum(axis=0, keepdims=True),
                  ((0, 0), (0, out_p - out_f)))                   # [1,out_p]

    out = _graph_conv_layer(a2_i8, xs2, w2p, dinv2, b2s, apply_tanh=False, tm=tm)
    return out[:N, :out_f]


def rgcn_reference(adj1, adj2, emb, w1, b1, w2, b2):
    """Pure-JAX f32 reference (mirrors the PyTorch/DGL math)."""
    def layer(adj, x, w, b):
        out = 0.0
        for r in range(adj.shape[0]):
            a = adj[r]
            dinv = jax.lax.rsqrt(jnp.maximum(a.sum(axis=1), 1.0))[:, None]
            sinv = jax.lax.rsqrt(jnp.maximum(a.sum(axis=0), 1.0))[None, :]
            out = out + dinv * ((a * sinv) @ x @ w[r]) + b[r]
        return out
    h = jnp.tanh(layer(adj1, emb, w1, b1))
    return layer(adj2, h, w2, b2)


class RGCNModelPallas:
    """Deterministically-initialized RGCN; forward matches the PyTorch module."""

    def __init__(self, in_feats, hid_feats, out_feats, n_nodes, rel_names, key):
        self.rel_names = list(rel_names)
        R = len(self.rel_names)
        k = jax.random.split(key, 3)
        self.embedding = jax.random.normal(k[0], (n_nodes, in_feats), jnp.float32)
        self.W1 = jax.random.normal(k[1], (R, in_feats, hid_feats), jnp.float32) * 0.1
        self.b1 = jnp.zeros((R, hid_feats), jnp.float32)
        self.W2 = jax.random.normal(k[2], (R, hid_feats, out_feats), jnp.float32) * 0.1
        self.b2 = jnp.zeros((R, out_feats), jnp.float32)

    def __call__(self, g, node_ids):
        """g = (adj_layer1, adj_layer2), each [R, N, N] dense 0/1 adjacency."""
        emb = jnp.take(self.embedding, node_ids, axis=0)   # embedding gather (XLA glue)
        return rgcn_forward(g[0], g[1], emb,
                            self.W1, self.b1, self.W2, self.b2)


if __name__ == "__main__":
    key = jax.random.PRNGKey(0)
    n_nodes = 24          # embedding table size
    N = 16                # number of 'comp' nodes in the (dense) graphs
    in_feats, hid_feats, out_feats = 32, 64, 32
    rel_names = ["rel_a", "rel_b"]
    R = len(rel_names)

    k_model, k_ids, k_g1, k_g2 = jax.random.split(key, 4)
    model = RGCNModelPallas(in_feats, hid_feats, out_feats, n_nodes, rel_names,
                            k_model)

    node_ids = jax.random.randint(k_ids, (N,), 0, n_nodes)
    adj1 = (jax.random.uniform(k_g1, (R, N, N)) < 0.3).astype(jnp.float32)
    adj2 = (jax.random.uniform(k_g2, (R, N, N)) < 0.3).astype(jnp.float32)

    out = model((adj1, adj2), node_ids)
    out = jax.block_until_ready(out)

    assert out.shape == (N, out_feats)
    assert bool(jnp.all(jnp.isfinite(out)))

    # bf16 MXU operands => loose tolerance vs. the f32 reference
    emb = jnp.take(model.embedding, node_ids, axis=0)
    ref = rgcn_reference(adj1, adj2, emb, model.W1, model.b1, model.W2, model.b2)
    max_err = float(jnp.max(jnp.abs(out - ref)))
    assert max_err < 2e-2, f"max abs error {max_err}"

    print("KERNEL_OK")
</pallas_src>

<mosaic_0001>
module attributes {stable_mosaic.version = 11 : i64} {
  func.func @rgcn_layer_kernel(%arg0: i32, %arg1: i32, %arg2: memref<1x128x128xi8, #tpu.memory_space<vmem>>, %arg3: memref<1x128x128xbf16, #tpu.memory_space<vmem>>, %arg4: memref<1x128x128xbf16, #tpu.memory_space<vmem>>, %arg5: memref<1x128x1xf32, #tpu.memory_space<vmem>>, %arg6: memref<1x128xf32, #tpu.memory_space<vmem>>, %arg7: memref<128x128xf32, #tpu.memory_space<vmem>>, %arg8: memref<128x128xf32, #tpu.memory_space<vmem>>) attributes {dimension_semantics = [#tpu.dimension_semantics<parallel>, #tpu.dimension_semantics<arbitrary>], iteration_bounds = array<i64: 1, 2>, scalar_prefetch = 0 : i64, scratch_operands = 1 : i64, tpu.core_type = #tpu.core_type<tc>, window_params = [{transform_indices = @transform_0, window_bounds = array<i64: 1, 128, 128>}, {transform_indices = @transform_1, window_bounds = array<i64: 1, 128, 128>}, {transform_indices = @transform_2, window_bounds = array<i64: 1, 128, 128>}, {transform_indices = @transform_3, window_bounds = array<i64: 1, 128, 1>}, {pipeline_mode = #tpu.pipeline_mode<synchronous>, transform_indices = @transform_4, window_bounds = array<i64: 1, 128>}, {transform_indices = @transform_5, window_bounds = array<i64: 128, 128>}]} {
    %c0_i32 = arith.constant 0 : i32
    %0 = arith.cmpi eq, %arg1, %c0_i32 : i32
    %1 = arith.extui %0 : i1 to i32
    %c0_i32_0 = arith.constant 0 : i32
    %2 = arith.cmpi ne, %1, %c0_i32_0 : i32
    scf.if %2 {
      %cst_18 = arith.constant 0.000000e+00 : f32
      %24 = vector.broadcast %cst_18 : f32 to vector<128x128xf32>
      %c0_19 = arith.constant 0 : index
      %c0_20 = arith.constant 0 : index
      %25 = vector.load %arg8[%c0_19, %c0_20] : memref<128x128xf32, #tpu.memory_space<vmem>>, vector<128x128xf32>
      tpu.vector_store %arg8[%c0_19, %c0_20], %24 {strides = array<i32>} : memref<128x128xf32, #tpu.memory_space<vmem>>, vector<128x128xf32>,
    } else {
    }
    %c0 = arith.constant 0 : index
    %c0_1 = arith.constant 0 : index
    %c0_2 = arith.constant 0 : index
    %3 = vector.load %arg2[%c0, %c0_1, %c0_2] : memref<1x128x128xi8, #tpu.memory_space<vmem>>, vector<1x128x128xi8>
    %4 = vector.shape_cast %3 : vector<1x128x128xi8> to vector<128x128xi8>
    %5 = arith.sitofp %4 : vector<128x128xi8> to vector<128x128xf32>
    %6 = arith.truncf %5 : vector<128x128xf32> to vector<128x128xbf16>
    %c0_3 = arith.constant 0 : index
    %c0_4 = arith.constant 0 : index
    %c0_5 = arith.constant 0 : index
    %7 = vector.load %arg3[%c0_3, %c0_4, %c0_5] : memref<1x128x128xbf16, #tpu.memory_space<vmem>>, vector<1x128x128xbf16>
    %8 = vector.shape_cast %7 : vector<1x128x128xbf16> to vector<128x128xbf16>
    %cst = arith.constant dense<0.000000e+00> : vector<128x128xf32>
    %9 = tpu.matmul %6, %8, %cst {dimension_numbers = #tpu.dot_dimension_numbers<[1], [0], [0], [1], [0, 0, 1, 1], [], []>} : vector<128x128xbf16>, vector<128x128xbf16>, vector<128x128xf32> -> vector<128x128xf32>
    %10 = arith.truncf %9 : vector<128x128xf32> to vector<128x128xbf16>
    %c0_6 = arith.constant 0 : index
    %c0_7 = arith.constant 0 : index
    %c0_8 = arith.constant 0 : index
    %11 = vector.load %arg4[%c0_6, %c0_7, %c0_8] : memref<1x128x128xbf16, #tpu.memory_space<vmem>>, vector<1x128x128xbf16>
    %12 = vector.shape_cast %11 : vector<1x128x128xbf16> to vector<128x128xbf16>
    %cst_9 = arith.constant dense<0.000000e+00> : vector<128x128xf32>
    %13 = tpu.matmul %10, %12, %cst_9 {dimension_numbers = #tpu.dot_dimension_numbers<[1], [0], [0], [1], [0, 0, 1, 1], [], []>} : vector<128x128xbf16>, vector<128x128xbf16>, vector<128x128xf32> -> vector<128x128xf32>
    %c0_10 = arith.constant 0 : index
    %c0_11 = arith.constant 0 : index
    %14 = vector.load %arg8[%c0_10, %c0_11] : memref<128x128xf32, #tpu.memory_space<vmem>>, vector<128x128xf32>
    %c0_12 = arith.constant 0 : index
    %c0_13 = arith.constant 0 : index
    %c0_14 = arith.constant 0 : index
    %15 = vector.load %arg5[%c0_12, %c0_13, %c0_14] : memref<1x128x1xf32, #tpu.memory_space<vmem>>, vector<1x128x1xf32>
    %16 = vector.shape_cast %15 : vector<1x128x1xf32> to vector<128x1xf32>
    %17 = vector.broadcast %16 : vector<128x1xf32> to vector<128x128xf32>
    %18 = arith.mulf %17, %13 : vector<128x128xf32>
    %19 = arith.addf %14, %18 : vector<128x128xf32>
    %c0_15 = arith.constant 0 : index
    %c0_16 = arith.constant 0 : index
    %20 = vector.load %arg8[%c0_15, %c0_16] : memref<128x128xf32, #tpu.memory_space<vmem>>, vector<128x128xf32>
    tpu.vector_store %arg8[%c0_15, %c0_16], %19 {strides = array<i32>} : memref<128x128xf32, #tpu.memory_space<vmem>>, vector<128x128xf32>,
    %c1_i32 = arith.constant 1 : i32
    %21 = arith.cmpi eq, %arg1, %c1_i32 : i32
    %22 = arith.extui %21 : i1 to i32
    %c0_i32_17 = arith.constant 0 : i32
    %23 = arith.cmpi ne, %22, %c0_i32_17 : i32
    scf.if %23 {
      %c0_18 = arith.constant 0 : index
      %c0_19 = arith.constant 0 : index
      %24 = vector.load %arg8[%c0_18, %c0_19] : memref<128x128xf32, #tpu.memory_space<vmem>>, vector<128x128xf32>
      %c0_20 = arith.constant 0 : index
      %c0_21 = arith.constant 0 : index
      %25 = vector.load %arg6[%c0_20, %c0_21] : memref<1x128xf32, #tpu.memory_space<vmem>>, vector<1x128xf32>
      %26 = vector.broadcast %25 : vector<1x128xf32> to vector<128x128xf32>
      %27 = arith.addf %24, %26 : vector<128x128xf32>
      %c0_22 = arith.constant 0 : index
      %c0_23 = arith.constant 0 : index
      %28 = vector.load %arg7[%c0_22, %c0_23] : memref<128x128xf32, #tpu.memory_space<vmem>>, vector<128x128xf32>
      tpu.vector_store %arg7[%c0_22, %c0_23], %27 {strides = array<i32>} : memref<128x128xf32, #tpu.memory_space<vmem>>, vector<128x128xf32>,
    } else {
    }
    return
  }
  func.func @transform_0(%arg0: i32, %arg1: i32) -> (i32, i32, i32) {
    %c0_i32 = arith.constant 0 : i32
    %c0_i32_0 = arith.constant 0 : i32
    return %arg1, %arg0, %c0_i32 : i32, i32, i32
  }
  func.func @transform_1(%arg0: i32, %arg1: i32) -> (i32, i32, i32) {
    %c0_i32 = arith.constant 0 : i32
    %c0_i32_0 = arith.constant 0 : i32
    %c0_i32_1 = arith.constant 0 : i32
    return %arg1, %c0_i32, %c0_i32_0 : i32, i32, i32
  }
  func.func @transform_2(%arg0: i32, %arg1: i32) -> (i32, i32, i32) {
    %c0_i32 = arith.constant 0 : i32
    %c0_i32_0 = arith.constant 0 : i32
    %c0_i32_1 = arith.constant 0 : i32
    return %arg1, %c0_i32, %c0_i32_0 : i32, i32, i32
  }
  func.func @transform_3(%arg0: i32, %arg1: i32) -> (i32, i32, i32) {
    %c0_i32 = arith.constant 0 : i32
    %c0_i32_0 = arith.constant 0 : i32
    return %arg1, %arg0, %c0_i32 : i32, i32, i32
  }
  func.func @transform_4(%arg0: i32, %arg1: i32) -> (i32, i32) {
    %c0_i32 = arith.constant 0 : i32
    %c0_i32_0 = arith.constant 0 : i32
    %c0_i32_1 = arith.constant 0 : i32
    return %c0_i32, %c0_i32_0 : i32, i32
  }
  func.func @transform_5(%arg0: i32, %arg1: i32) -> (i32, i32) {
    %c0_i32 = arith.constant 0 : i32
    %c0_i32_0 = arith.constant 0 : i32
    return %arg0, %c0_i32 : i32, i32
  }
}

module attributes {stable_mosaic.version = 11 : i64} {
  func.func @rgcn_layer_kernel(%arg0: i32, %arg1: i32, %arg2: memref<1x128x128xi8, #tpu.memory_space<vmem>>, %arg3: memref<1x128x128xbf16, #tpu.memory_space<vmem>>, %arg4: memref<1x128x128xbf16, #tpu.memory_space<vmem>>, %arg5: memref<1x128x1xf32, #tpu.memory_space<vmem>>, %arg6: memref<1x128xf32, #tpu.memory_space<vmem>>, %arg7: memref<128x128xf32, #tpu.memory_space<vmem>>, %arg8: memref<128x128xf32, #tpu.memory_space<vmem>>) attributes {dimension_semantics = [#tpu.dimension_semantics<parallel>, #tpu.dimension_semantics<arbitrary>], iteration_bounds = array<i64: 1, 2>, scalar_prefetch = 0 : i64, scratch_operands = 1 : i64, tpu.core_type = #tpu.core_type<tc>, window_params = [{transform_indices = @transform_0, window_bounds = array<i64: 1, 128, 128>}, {transform_indices = @transform_1, window_bounds = array<i64: 1, 128, 128>}, {transform_indices = @transform_2, window_bounds = array<i64: 1, 128, 128>}, {transform_indices = @transform_3, window_bounds = array<i64: 1, 128, 1>}, {pipeline_mode = #tpu.pipeline_mode<synchronous>, transform_indices = @transform_4, window_bounds = array<i64: 1, 128>}, {transform_indices = @transform_5, window_bounds = array<i64: 128, 128>}]} {
    %c0_i32 = arith.constant 0 : i32
    %0 = arith.cmpi eq, %arg1, %c0_i32 : i32
    %1 = arith.extui %0 : i1 to i32
    %c0_i32_0 = arith.constant 0 : i32
    %2 = arith.cmpi ne, %1, %c0_i32_0 : i32
    scf.if %2 {
      %cst_18 = arith.constant 0.000000e+00 : f32
      %24 = vector.broadcast %cst_18 : f32 to vector<128x128xf32>
      %c0_19 = arith.constant 0 : index
      %c0_20 = arith.constant 0 : index
      %25 = vector.load %arg8[%c0_19, %c0_20] : memref<128x128xf32, #tpu.memory_space<vmem>>, vector<128x128xf32>
      tpu.vector_store %arg8[%c0_19, %c0_20], %24 {strides = array<i32>} : memref<128x128xf32, #tpu.memory_space<vmem>>, vector<128x128xf32>,
    } else {
    }
    %c0 = arith.constant 0 : index
    %c0_1 = arith.constant 0 : index
    %c0_2 = arith.constant 0 : index
    %3 = vector.load %arg2[%c0, %c0_1, %c0_2] : memref<1x128x128xi8, #tpu.memory_space<vmem>>, vector<1x128x128xi8>
    %4 = vector.shape_cast %3 : vector<1x128x128xi8> to vector<128x128xi8>
    %5 = arith.sitofp %4 : vector<128x128xi8> to vector<128x128xf32>
    %6 = arith.truncf %5 : vector<128x128xf32> to vector<128x128xbf16>
    %c0_3 = arith.constant 0 : index
    %c0_4 = arith.constant 0 : index
    %c0_5 = arith.constant 0 : index
    %7 = vector.load %arg3[%c0_3, %c0_4, %c0_5] : memref<1x128x128xbf16, #tpu.memory_space<vmem>>, vector<1x128x128xbf16>
    %8 = vector.shape_cast %7 : vector<1x128x128xbf16> to vector<128x128xbf16>
    %cst = arith.constant dense<0.000000e+00> : vector<128x128xf32>
    %9 = tpu.matmul %6, %8, %cst {dimension_numbers = #tpu.dot_dimension_numbers<[1], [0], [0], [1], [0, 0, 1, 1], [], []>} : vector<128x128xbf16>, vector<128x128xbf16>, vector<128x128xf32> -> vector<128x128xf32>
    %10 = arith.truncf %9 : vector<128x128xf32> to vector<128x128xbf16>
    %c0_6 = arith.constant 0 : index
    %c0_7 = arith.constant 0 : index
    %c0_8 = arith.constant 0 : index
    %11 = vector.load %arg4[%c0_6, %c0_7, %c0_8] : memref<1x128x128xbf16, #tpu.memory_space<vmem>>, vector<1x128x128xbf16>
    %12 = vector.shape_cast %11 : vector<1x128x128xbf16> to vector<128x128xbf16>
    %cst_9 = arith.constant dense<0.000000e+00> : vector<128x128xf32>
    %13 = tpu.matmul %10, %12, %cst_9 {dimension_numbers = #tpu.dot_dimension_numbers<[1], [0], [0], [1], [0, 0, 1, 1], [], []>} : vector<128x128xbf16>, vector<128x128xbf16>, vector<128x128xf32> -> vector<128x128xf32>
    %c0_10 = arith.constant 0 : index
    %c0_11 = arith.constant 0 : index
    %14 = vector.load %arg8[%c0_10, %c0_11] : memref<128x128xf32, #tpu.memory_space<vmem>>, vector<128x128xf32>
    %c0_12 = arith.constant 0 : index
    %c0_13 = arith.constant 0 : index
    %c0_14 = arith.constant 0 : index
    %15 = vector.load %arg5[%c0_12, %c0_13, %c0_14] : memref<1x128x1xf32, #tpu.memory_space<vmem>>, vector<1x128x1xf32>
    %16 = vector.shape_cast %15 : vector<1x128x1xf32> to vector<128x1xf32>
    %17 = vector.broadcast %16 : vector<128x1xf32> to vector<128x128xf32>
    %18 = arith.mulf %17, %13 : vector<128x128xf32>
    %19 = arith.addf %14, %18 : vector<128x128xf32>
    %c0_15 = arith.constant 0 : index
    %c0_16 = arith.constant 0 : index
    %20 = vector.load %arg8[%c0_15, %c0_16] : memref<128x128xf32, #tpu.memory_space<vmem>>, vector<128x128xf32>
    tpu.vector_store %arg8[%c0_15, %c0_16], %19 {strides = array<i32>} : memref<128x128xf32, #tpu.memory_space<vmem>>, vector<128x128xf32>,
    %c1_i32 = arith.constant 1 : i32
    %21 = arith.cmpi eq, %arg1, %c1_i32 : i32
    %22 = arith.extui %21 : i1 to i32
    %c0_i32_17 = arith.constant 0 : i32
    %23 = arith.cmpi ne, %22, %c0_i32_17 : i32
    scf.if %23 {
      %c0_18 = arith.constant 0 : index
      %c0_19 = arith.constant 0 : index
      %24 = vector.load %arg8[%c0_18, %c0_19] : memref<128x128xf32, #tpu.memory_space<vmem>>, vector<128x128xf32>
      %c0_20 = arith.constant 0 : index
      %c0_21 = arith.constant 0 : index
      %25 = vector.load %arg6[%c0_20, %c0_21] : memref<1x128xf32, #tpu.memory_space<vmem>>, vector<1x128xf32>
      %26 = vector.broadcast %25 : vector<1x128xf32> to vector<128x128xf32>
      %27 = arith.addf %24, %26 : vector<128x128xf32>
      %28 = math.tanh %27 : vector<128x128xf32>
      %c0_22 = arith.constant 0 : index
      %c0_23 = arith.constant 0 : index
      %29 = vector.load %arg7[%c0_22, %c0_23] : memref<128x128xf32, #tpu.memory_space<vmem>>, vector<128x128xf32>
      tpu.vector_store %arg7[%c0_22, %c0_23], %28 {strides = array<i32>} : memref<128x128xf32, #tpu.memory_space<vmem>>, vector<128x128xf32>,
    } else {
    }
    return
  }
  func.func @transform_0(%arg0: i32, %arg1: i32) -> (i32, i32, i32) {
    %c0_i32 = arith.constant 0 : i32
    %c0_i32_0 = arith.constant 0 : i32
    return %arg1, %arg0, %c0_i32 : i32, i32, i32
  }
  func.func @transform_1(%arg0: i32, %arg1: i32) -> (i32, i32, i32) {
    %c0_i32 = arith.constant 0 : i32
    %c0_i32_0 = arith.constant 0 : i32
    %c0_i32_1 = arith.constant 0 : i32
    return %arg1, %c0_i32, %c0_i32_0 : i32, i32, i32
  }
  func.func @transform_2(%arg0: i32, %arg1: i32) -> (i32, i32, i32) {
    %c0_i32 = arith.constant 0 : i32
    %c0_i32_0 = arith.constant 0 : i32
    %c0_i32_1 = arith.constant 0 : i32
    return %arg1, %c0_i32, %c0_i32_0 : i32, i32, i32
  }
  func.func @transform_3(%arg0: i32, %arg1: i32) -> (i32, i32, i32) {
    %c0_i32 = arith.constant 0 : i32
    %c0_i32_0 = arith.constant 0 : i32
    return %arg1, %arg0, %c0_i32 : i32, i32, i32
  }
  func.func @transform_4(%arg0: i32, %arg1: i32) -> (i32, i32) {
    %c0_i32 = arith.constant 0 : i32
    %c0_i32_0 = arith.constant 0 : i32
    %c0_i32_1 = arith.constant 0 : i32
    return %c0_i32, %c0_i32_0 : i32, i32
  }
  func.func @transform_5(%arg0: i32, %arg1: i32) -> (i32, i32) {
    %c0_i32 = arith.constant 0 : i32
    %c0_i32_0 = arith.constant 0 : i32
    return %arg0, %c0_i32 : i32, i32
  }
}

</mosaic_0001>

<bundles_post_ra>
// kernel: rgcn_forward.3
= control target key start
LH: loop header
LB: loop body
LE: loop exit
PB: predicated region body
PF: predicated region fallthrough
CT: control target
= control target key end

     0   :  { %s1257_s18 = smov 0   ;;  %s1259_s19 = smov 0   ;;  %s1397_s0 = inlined_call_operand.vmem [shape: s8[2,128,128], index: 0, kind: input, shape index: {}]   ;;  %s1398_s1 = inlined_call_operand.vmem [shape: bf16[2,128,128], index: 1, kind: input, shape index: {}]   ;;  %s1399_s2 = inlined_call_operand.vmem [shape: bf16[2,128,128], index: 2, kind: input, shape index: {}]   ;;  %s1400_s3 = inlined_call_operand.vmem [shape: f32[2,128,1], index: 3, kind: input, shape index: {}]   ;;  %s1401_s4 = inlined_call_operand.vmem [shape: f32[1,128], index: 4, kind: input, shape index: {}]   ;;  %s1402_s5 = inlined_call_operand.vmem [shape: f32[128,128], index: 5, kind: output, shape index: {}]  }
   0x1   :  { %s1261_s20 = smov 0  }
   0x2 LB: > { %s24_s21 = sadd.s32 1, %s1219_s19  ;;  %p1025_p0 = scmp.ge.s32.totalorder %s1223_s20, 1  ;;  %s1223_s20 = sphi %s1261_s20, %s15_s20   ;;  %s1219_s19 = sphi %s1259_s19, %s1404_s19   ;;  %s1215_s18 = sphi %s1257_s18, %s1403_s18  }
   0x3   : > { %p25_p1 = scmp.ge.s32.totalorder %s24_s21, 2  ;;  %p243_p2 = scmp.lt.s32.totalorder %s1223_s20, 3 }
   0x5   : > { %s1406_s21 = smov (%p25_p1, %s24_s21), 0  ;;  %p244_p3 = pnand %p1025_p0, %p243_p2 }
   0x6   : > { %p295_p4 = scmp.lt.s32.totalorder (!%p244_p3), %s1215_s18, 1  ;;  %p1034_p5 = scmp.ne.s32.totalorder (!%p244_p3), %s1215_s18, 0 }
   0x7   : > { %247 = sbr.rel (%p244_p3) target bundleno = 501 (0x1f5), region = 40 }
   0xc   : > { %s296_s22 = scalar_select %p295_p4, %s1215_s18, 1 }
   0xd   : > { %334 = sbr.rel (%p1034_p5) target bundleno = 27 (0x1b), region = 44 }
   0xe   : > { %s1057_s23 = sshll.u32 %s296_s22, 5  ;;  %s1058_s24 = sshll.u32 %s296_s22, 6 }
   0xf   : > { %s1282_s27 = scalar_lea.vmem %s1397_s0, %s1057_s23  ;;  %s1287_s30 = scalar_lea.vmem %s1398_s1, %s1058_s24 }
  0x10   : > { %s1292_s8 = scalar_lea.vmem %s1399_s2, %s1058_s24  ;;  %s1060_s9 = sshll.u32 %s296_s22, 7 }
  0x11   : > { %s1297_s12 = scalar_lea.vmem %s1400_s3, %s1060_s9 }
  0x12   : > { %v1225_v0 = vmov 0.0  }
  0x13   : > { %335 = vst [vmem:[#allocation2 + $0x30] sm:$0xff] %v1225_v0  ;;  %336 = vst [vmem:[#allocation2] sm:$0xff] %v1225_v0 }
  0x14   : > { %337 = vst [vmem:[#allocation2 + $0x58] sm:$0xff] %v1225_v0  ;;  %338 = vst [vmem:[#allocation2 + $0x18] sm:$0xff] %v1225_v0 }
  0x15   : > { %339 = vst [vmem:[#allocation2 + $0x50] sm:$0xff] %v1225_v0  ;;  %340 = vst [vmem:[#allocation2 + $0x68] sm:$0xff] %v1225_v0 }
  0x16   : > { %341 = vst [vmem:[#allocation2 + $0x8] sm:$0xff] %v1225_v0  ;;  %342 = vst [vmem:[#allocation2 + $0x48] sm:$0xff] %v1225_v0 }
  0x17   : > { %343 = vst [vmem:[#allocation2 + $0x40] sm:$0xff] %v1225_v0  ;;  %344 = vst [vmem:[#allocation2 + $0x20] sm:$0xff] %v1225_v0 }
  0x18   : > { %345 = vst [vmem:[#allocation2 + $0x10] sm:$0xff] %v1225_v0  ;;  %346 = vst [vmem:[#allocation2 + $0x38] sm:$0xff] %v1225_v0 }
  0x19   : > { %347 = vst [vmem:[#allocation2 + $0x60] sm:$0xff] %v1225_v0  ;;  %348 = vst [vmem:[#allocation2 + $0x70] sm:$0xff] %v1225_v0 }
  0x1a   : > { %349 = vst [vmem:[#allocation2 + $0x78] sm:$0xff] %v1225_v0  ;;  %350 = vst [vmem:[#allocation2 + $0x28] sm:$0xff] %v1225_v0 }
  0x1b PF: > { %v1185_v1 = vld [vmem:[%s1287_s30 + $0x38] sm:$0xff]   ;;  %v1186_v2 = vld [vmem:[%s1287_s30 + $0x30] sm:$0xff]   ;;  %v1187_v3 = vld [vmem:[%s1287_s30 + $0x28] sm:$0xff]   ;;  %v1226_v31 = vmov 0   ;;  %p1051_p6 = scmp.ne.s32.totalorder %s1215_s18, 1 }
  0x1c   : > { %1093 = vmatprep.subr.bf16.mxu0 %v1185_v1  ;;  %v1188_v4 = vld [vmem:[%s1287_s30 + $0x20] sm:$0xff]   ;;  %v1193_v7 = vld [vmem:[%s1292_s8 + $0x38] sm:$0xff]   ;;  %v1194_v8 = vld [vmem:[%s1292_s8 + $0x30] sm:$0xff]   ;;  %1184 = vset.pattern.permute.xlu1 %v1226_v31 }
  0x1d   : > { %1094 = vmatpush3.bf16.msra.mxu0 %v1185_v1  ;;  %v351_v5 = vld [vmem:[%s1282_s27] sm:$0xff]  ;;  %v1189_v9 = vld [vmem:[%s1287_s30 + $0x18] sm:$0xff]   ;;  %1125 = vmatprep.subr.bf16.mxu1 %v1193_v7  ;;  %v1195_v10 = vld [vmem:[%s1292_s8 + $0x28] sm:$0xff]  }
  0x1e   : > { %1095 = vmatprep.subr.bf16.mxu0 %v1186_v2  ;;  %v355_v6 = vunpack.c.l.s8.bf16 %v351_v5  ;;  %1126 = vmatpush3.bf16.msra.mxu1 %v1193_v7  ;;  %v1190_v11 = vld [vmem:[%s1287_s30 + $0x10] sm:$0xff]   ;;  %v1196_v12 = vld [vmem:[%s1292_s8 + $0x20] sm:$0xff]   ;;  %v1191_v13 = vld [vmem:[%s1287_s30 + $0x8] sm:$0xff]   ;;  %v356_v18 = vunpack.c.h.s8.bf16 %v351_v5 }
  0x1f   : > { %1127 = vmatprep.subr.bf16.mxu1 %v1194_v8  ;;  %v1197_v14 = vld [vmem:[%s1292_s8 + $0x18] sm:$0xff]   ;;  %v1192_v15 = vld [vmem:[%s1287_s30] sm:$0xff]   ;;  %v1198_v16 = vld [vmem:[%s1292_s8 + $0x10] sm:$0xff]   ;;  %1183 = vset.pattern.permute.xlu0 %v1226_v31 }
  0x20   : > { %1109 = vmatprep.mubr.bf16.mxu0 %v355_v6  ;;  %v352_v17 = vld [vmem:[%s1282_s27 + $0x8] sm:$0xff]  ;;  %v353_v20 = vld [vmem:[%s1282_s27 + $0x10] sm:$0xff]  ;;  %v354_v23 = vld [vmem:[%s1282_s27 + $0x18] sm:$0xff] }
  0x21   : > { %1096 = vmatpush3.bf16.msra.mxu0 %v1186_v2  ;;  %v357_v19 = vunpack.c.l.s8.bf16 %v352_v17  ;;  %v358_v21 = vunpack.c.h.s8.bf16 %v352_v17  ;;  %v359_v22 = vunpack.c.l.s8.bf16 %v353_v20  ;;  %v360_v24 = vunpack.c.h.s8.bf16 %v353_v20  ;;  %v1199_v27 = vld [vmem:[%s1292_s8 + $0x8] sm:$0xff]   ;;  %v1200_v28 = vld [vmem:[%s1292_s8] sm:$0xff]   ;;  %v711_v29 = vld [vmem:[%s1297_s12 + $0x10] sm:$0xff] }
  0x22   : > { %1097 = vmatprep.subr.bf16.mxu0 %v1187_v3  ;;  %1128 = vmatpush3.bf16.msra.mxu1 %v1194_v8  ;;  %v361_v25 = vunpack.c.l.s8.bf16 %v354_v23  ;;  %v362_v26 = vunpack.c.h.s8.bf16 %v354_v23  ;;  %v709_v30 = vld [vmem:[%s1297_s12] sm:$0xff]  ;;  %v712_v32 = vld [vmem:[%s1297_s12 + $0x18] sm:$0xff]  ;;  %v710_v33 = vld [vmem:[%s1297_s12 + $0x8] sm:$0xff] }
  0x23   : > { %1129 = vmatprep.subr.bf16.mxu1 %v1195_v10  ;;  %737 = vperm.xlu1 %1184, %v711_v29   ;;  %v714_v34 = vld [vmem:[%s1297_s12 + $0x28] sm:$0xff]  ;;  %v713_v35 = vld [vmem:[%s1297_s12 + $0x20] sm:$0xff]  ;;  %v716_v36 = vld [vmem:[%s1297_s12 + $0x38] sm:$0xff] }
  0x24   : > { %727 = vperm.xlu0 %1183, %v709_v30   ;;  %v715_v37 = vld [vmem:[%s1297_s12 + $0x30] sm:$0xff]  ;;  %v718_v38 = vld [vmem:[%s1297_s12 + $0x48] sm:$0xff]  ;;  %v717_v39 = vld [vmem:[%s1297_s12 + $0x40] sm:$0xff] }
  0x25   : > { %1098 = vmatpush3.bf16.msra.mxu0 %v1187_v3  ;;  %v720_v40 = vld [vmem:[%s1297_s12 + $0x58] sm:$0xff]  ;;  %v719_v41 = vld [vmem:[%s1297_s12 + $0x50] sm:$0xff]  ;;  %v722_v42 = vld [vmem:[%s1297_s12 + $0x68] sm:$0xff] }
  0x26   : > { %1099 = vmatprep.subr.bf16.mxu0 %v1188_v4  ;;  %1130 = vmatpush3.bf16.msra.mxu1 %v1195_v10  ;;  %v721_v43 = vld [vmem:[%s1297_s12 + $0x60] sm:$0xff]  ;;  %v724_v44 = vld [vmem:[%s1297_s12 + $0x78] sm:$0xff]  ;;  %v723_v45 = vld [vmem:[%s1297_s12 + $0x70] sm:$0xff] }
  0x27   : > { %1131 = vmatprep.subr.bf16.mxu1 %v1196_v12  ;;  %742 = vperm.xlu1 %1184, %v712_v32   ;;  %v693_v17 = vld [vmem:[#allocation2 + $0x30] sm:$0xff]  ;;  %v699_v31 = vld [vmem:[#allocation2 + $0x8] sm:$0xff] }
  0x28   : > { %732 = vperm.xlu0 %1183, %v710_v33  }
  0x29   : > { %1100 = vmatpush3.bf16.msra.mxu0 %v1188_v4 }
  0x2a   : > { %1101 = vmatprep.subr.bf16.mxu0 %v1189_v9  ;;  %1132 = vmatpush3.bf16.msra.mxu1 %v1196_v12 }
  0x2b   : > { %1133 = vmatprep.subr.bf16.mxu1 %v1197_v14  ;;  %752 = vperm.xlu1 %1184, %v714_v34  }
  0x2c   : > { %747 = vperm.xlu0 %1183, %v713_v35  }
  0x2d   : > { %1102 = vmatpush3.bf16.msra.mxu0 %v1189_v9 }
  0x2e   : > { %1103 = vmatprep.subr.bf16.mxu0 %v1190_v11  ;;  %1134 = vmatpush3.bf16.msra.mxu1 %v1197_v14  ;;  %v695_v14 = vld [vmem:[#allocation2 + $0x58] sm:$0xff] }
  0x2f   : > { %1135 = vmatprep.subr.bf16.mxu1 %v1198_v16  ;;  %762 = vperm.xlu1 %1184, %v716_v36   ;;  %v697_v36 = vld [vmem:[#allocation2 + $0x50] sm:$0xff] }
  0x30   : > { %757 = vperm.xlu0 %1183, %v715_v37  }
  0x31   : > { %1104 = vmatpush3.bf16.msra.mxu0 %v1190_v11 }
  0x32   : > { %1105 = vmatprep.subr.bf16.mxu0 %v1191_v13  ;;  %1136 = vmatpush3.bf16.msra.mxu1 %v1198_v16 }
  0x33   : > { %1137 = vmatprep.subr.bf16.mxu1 %v1199_v27  ;;  %772 = vperm.xlu1 %1184, %v718_v38  }
  0x34   : > { %767 = vperm.xlu0 %1183, %v717_v39  }
  0x35   : > { %1106 = vmatpush3.bf16.msra.mxu0 %v1191_v13 }
  0x36   : > { %1107 = vmatprep.subr.bf16.mxu0 %v1192_v15  ;;  %1138 = vmatpush3.bf16.msra.mxu1 %v1199_v27  ;;  %v694_v27 = vld [vmem:[#allocation2] sm:$0xff] }
  0x37   : > { %1139 = vmatprep.subr.bf16.mxu1 %v1200_v28  ;;  %782 = vperm.xlu1 %1184, %v720_v40  }
  0x38   : > { %777 = vperm.xlu0 %1183, %v719_v41   ;;  %v700_v41 = vld [vmem:[#allocation2 + $0x48] sm:$0xff] }
  0x39   : > { %1108 = vmatpush3.bf16.msra.mxu0 %v1192_v15 }
  0x3a   : > { %1140 = vmatpush3.bf16.msra.mxu1 %v1200_v28 }
  0x3b   : > { %792 = vperm.xlu1 %1184, %v722_v42  }
  0x3c   : > { %1110 = vmatmul.mubr.bf16.vlgmr.msra.gmra.mxu0 %v356_v18  ;;  %787 = vperm.xlu0 %1183, %v721_v43  }
  0x3d   : > { %1113 = vmatprep.mubr.bf16.mxu0 %v357_v19 }
  0x3f   : > { %802 = vperm.xlu1 %1184, %v724_v44  }
  0x40   : > { %797 = vperm.xlu0 %1183, %v723_v45   ;;  %v698_v45 = vld [vmem:[#allocation2 + $0x68] sm:$0xff] }
  0x44   : > { %1114 = vmatmul.mubr.bf16.gmra.mxu0 %v358_v21 }
  0x45   : > { %1117 = vmatprep.mubr.bf16.mxu0 %v359_v22  ;;  %v696_v22 = vld [vmem:[#allocation2 + $0x18] sm:$0xff] }
  0x4c   : > { %1118 = vmatmul.mubr.bf16.gmra.mxu0 %v360_v24 }
  0x4d   : > { %1121 = vmatprep.mubr.bf16.mxu0 %v361_v25 }
  0x54   : > { %1122 = vmatmul.mubr.bf16.gmra.mxu0 %v362_v26 }
  0x9e   : > { %v738_v7 = vpop.permute.xlu1 %737 }
  0x9f   : > { %v728_v6 = vpop.permute.xlu0 %727 }
  0xa2   : > { %v743_v9 = vpop.permute.xlu1 %742 }
  0xa3   : > { %v733_v8 = vpop.permute.xlu0 %732 }
  0xa6   : > { %v753_v11 = vpop.permute.xlu1 %752 }
  0xa7   : > { %v748_v10 = vpop.permute.xlu0 %747 }
  0xaa   : > { %v763_v20 = vpop.permute.xlu1 %762 }
  0xab   : > { %v758_v12 = vpop.permute.xlu0 %757 }
  0xae   : > { %v773_v34 = vpop.permute.xlu1 %772 }
  0xaf   : > { %v768_v25 = vpop.permute.xlu0 %767 }
  0xb3   : > { %v778_v39 = vpop.permute.xlu0 %777 }
  0xfc   : > { %v1111_v46 = vpop.f32.mrf.mxu0 }
  0xfe   : > { %v461_v47 = vpop.f32.mrf.mxu0 }
 0x100   : > { %v1112_v48 = vpop.f32.mrf.mxu0 }
 0x101   : > { %v525_v51 = vpack.c.bf16 %v1112_v48, %v1111_v46  ;;  %v783_v48 = vpop.permute.xlu1 %782 }
 0x102   : > { %v464_v49 = vpop.f32.mrf.mxu0 }
 0x103   : > { %v524_v50 = vpack.c.bf16 %v464_v49, %v461_v47 }
 0x104   : > { %v1115_v52 = vpop.f32.mrf.mxu0 }
 0x105   : > { %1141 = vmatprep.mubr.bf16.mxu1 %v524_v50  ;;  %v703_v50 = vld [vmem:[#allocation2 + $0x10] sm:$0xff] }
 0x106   : > { %v477_v53 = vpop.f32.mrf.mxu0  ;;  %1142 = vmatmul.mubr.bf16.vlgmr.msra.gmra.mxu1 %v525_v51 }
 0x108   : > { %v1116_v54 = vpop.f32.mrf.mxu0 }
 0x109   : > { %v527_v57 = vpack.c.bf16 %v1116_v54, %v1115_v52 }
 0x10a   : > { %v480_v55 = vpop.f32.mrf.mxu0 }
 0x10b   : > { %v526_v56 = vpack.c.bf16 %v480_v55, %v477_v53  ;;  %v788_v53 = vpop.permute.xlu0 %787  ;;  %v701_v55 = vld [vmem:[#allocation2 + $0x40] sm:$0xff] }
 0x10c   : > { %v1119_v58 = vpop.f32.mrf.mxu0 }
 0x10d   : > { %1145 = vmatprep.mubr.bf16.mxu1 %v526_v56 }
 0x10e   : > { %v493_v59 = vpop.f32.mrf.mxu0  ;;  %1146 = vmatmul.mubr.bf16.gmra.mxu1 %v527_v57 }
 0x110   : > { %v1120_v60 = vpop.f32.mrf.mxu0 }
 0x111   : > { %v529_v63 = vpack.c.bf16 %v1120_v60, %v1119_v58 }
 0x112   : > { %v496_v61 = vpop.f32.mrf.mxu0 }
 0x113   : > { %v528_v62 = vpack.c.bf16 %v496_v61, %v493_v59  ;;  %v704_v59 = vld [vmem:[#allocation2 + $0x38] sm:$0xff] }
 0x114   : > { %v1123_v0 = vpop.f32.mrf.mxu0 }
 0x115   : > { %1149 = vmatprep.mubr.bf16.mxu1 %v528_v62  ;;  %v793_v62 = vpop.permute.xlu1 %792 }
 0x116   : > { %v509_v1 = vpop.f32.mrf.mxu0  ;;  %1150 = vmatmul.mubr.bf16.gmra.mxu1 %v529_v63 }
 0x118   : > { %v1124_v2 = vpop.f32.mrf.mxu0 }
 0x119   : > { %v531_v5 = vpack.c.bf16 %v1124_v2, %v1123_v0  ;;  %v702_v0 = vld [vmem:[#allocation2 + $0x20] sm:$0xff] }
 0x11a   : > { %v512_v3 = vpop.f32.mrf.mxu0 }
 0x11b   : > { %v530_v4 = vpack.c.bf16 %v512_v3, %v509_v1  ;;  %v798_v3 = vpop.permute.xlu0 %797 }
 0x11d   : > { %1153 = vmatprep.mubr.bf16.mxu1 %v530_v4 }
 0x11e   : > { %1154 = vmatmul.mubr.bf16.gmra.mxu1 %v531_v5  ;;  %v707_v5 = vld [vmem:[#allocation2 + $0x78] sm:$0xff] }
 0x1c6   : > { %v1143_v13 = vpop.f32.mrf.mxu1 }
 0x1c7   : > { %v807_v15 = vmul.f32 %v1143_v13, %v738_v7 }
 0x1c8   : > { %v630_v16 = vpop.f32.mrf.mxu1 }
 0x1c9   : > { %v823_v18 = vadd.f32 %v807_v15, %v695_v14  ;;  %v805_v19 = vmul.f32 %v728_v6, %v630_v16  ;;  %v708_v14 = vld [vmem:[#allocation2 + $0x28] sm:$0xff] }
 0x1ca   : > { %v1144_v21 = vpop.f32.mrf.mxu1 }
 0x1cb   : > { %839 = vst [vmem:[#allocation2 + $0x58] sm:$0xff] %v823_v18  ;;  %v821_v23 = vadd.f32 %v805_v19, %v693_v17  ;;  %v808_v24 = vmul.f32 %v1144_v21, %v743_v9  ;;  %v705_v9 = vld [vmem:[#allocation2 + $0x60] sm:$0xff]  ;;  %v706_v18 = vld [vmem:[#allocation2 + $0x70] sm:$0xff] }
 0x1cc   : > { %v633_v26 = vpop.f32.mrf.mxu1 }
 0x1cd   : > { %837 = vst [vmem:[#allocation2 + $0x30] sm:$0xff] %v821_v23  ;;  %v824_v28 = vadd.f32 %v808_v24, %v696_v22  ;;  %v806_v29 = vmul.f32 %v733_v8, %v633_v26 }
 0x1ce   : > { %v1147_v30 = vpop.f32.mrf.mxu1 }
 0x1cf   : > { %840 = vst [vmem:[#allocation2 + $0x18] sm:$0xff] %v824_v28  ;;  %v822_v32 = vadd.f32 %v806_v29, %v694_v27  ;;  %v811_v33 = vmul.f32 %v1147_v30, %v758_v12  ;;  %v803_v12 = vpop.permute.xlu1 %802 }
 0x1d0   : > { %v646_v35 = vpop.f32.mrf.mxu1 }
 0x1d1   : > { %838 = vst [vmem:[#allocation2] sm:$0xff] %v822_v32  ;;  %v827_v37 = vadd.f32 %v811_v33, %v699_v31  ;;  %v809_v38 = vmul.f32 %v748_v10, %v646_v35 }
 0x1d2   : > { %v1148_v40 = vpop.f32.mrf.mxu1 }
 0x1d3   : > { %843 = vst [vmem:[#allocation2 + $0x8] sm:$0xff] %v827_v37  ;;  %v825_v42 = vadd.f32 %v809_v38, %v697_v36  ;;  %v812_v43 = vmul.f32 %v1148_v40, %v763_v20 }
 0x1d4   : > { %v649_v44 = vpop.f32.mrf.mxu1 }
 0x1d5   : > { %841 = vst [vmem:[#allocation2 + $0x50] sm:$0xff] %v825_v42  ;;  %v828_v46 = vadd.f32 %v812_v43, %v700_v41  ;;  %v810_v47 = vmul.f32 %v753_v11, %v649_v44 }
 0x1d6   : > { %v1151_v49 = vpop.f32.mrf.mxu1 }
 0x1d7   : > { %844 = vst [vmem:[#allocation2 + $0x48] sm:$0xff] %v828_v46  ;;  %v826_v51 = vadd.f32 %v810_v47, %v698_v45  ;;  %v815_v52 = vmul.f32 %v1151_v49, %v778_v39 }
 0x1d8   : > { %v662_v54 = vpop.f32.mrf.mxu1 }
 0x1d9   : > { %842 = vst [vmem:[#allocation2 + $0x68] sm:$0xff] %v826_v51  ;;  %v831_v56 = vadd.f32 %v815_v52, %v703_v50  ;;  %v813_v57 = vmul.f32 %v768_v25, %v662_v54 }
 0x1da   : > { %v1152_v58 = vpop.f32.mrf.mxu1 }
 0x1db   : > { %847 = vst [vmem:[#allocation2 + $0x10] sm:$0xff] %v831_v56  ;;  %v829_v60 = vadd.f32 %v813_v57, %v701_v55  ;;  %v816_v61 = vmul.f32 %v1152_v58, %v783_v48 }
 0x1dc   : > { %v665_v63 = vpop.f32.mrf.mxu1 }
 0x1dd   : > { %845 = vst [vmem:[#allocation2 + $0x40] sm:$0xff] %v829_v60  ;;  %v832_v1 = vadd.f32 %v816_v61, %v704_v59  ;;  %v814_v2 = vmul.f32 %v773_v34, %v665_v63 }
 0x1de   : > { %v1155_v4 = vpop.f32.mrf.mxu1 }
 0x1df   : > { %848 = vst [vmem:[#allocation2 + $0x38] sm:$0xff] %v832_v1  ;;  %v830_v6 = vadd.f32 %v814_v2, %v702_v0  ;;  %v819_v7 = vmul.f32 %v1155_v4, %v798_v3 }
 0x1e0   : > { %v678_v8 = vpop.f32.mrf.mxu1 }
 0x1e1   : > { %846 = vst [vmem:[#allocation2 + $0x20] sm:$0xff] %v830_v6  ;;  %v835_v10 = vadd.f32 %v819_v7, %v707_v5  ;;  %v817_v11 = vmul.f32 %v788_v53, %v678_v8 }
 0x1e2   : > { %v1156_v13 = vpop.f32.mrf.mxu1 }
 0x1e3   : > { %851 = vst [vmem:[#allocation2 + $0x78] sm:$0xff] %v835_v10  ;;  %v833_v15 = vadd.f32 %v817_v11, %v705_v9  ;;  %v820_v16 = vmul.f32 %v1156_v13, %v803_v12 }
 0x1e4   : > { %v681_v17 = vpop.f32.mrf.mxu1 }
 0x1e5   : > { %849 = vst [vmem:[#allocation2 + $0x60] sm:$0xff] %v833_v15  ;;  %v836_v19 = vadd.f32 %v820_v16, %v708_v14  ;;  %v818_v20 = vmul.f32 %v793_v62, %v681_v17  ;;  %856 = sbr.rel (%p1051_p6) target bundleno = 501 (0x1f5), region = 48 }
 0x1e7   : > { %852 = vst [vmem:[#allocation2 + $0x28] sm:$0xff] %v836_v19  ;;  %v834_v21 = vadd.f32 %v818_v20, %v706_v18 }
 0x1e9   : > { %850 = vst [vmem:[#allocation2 + $0x70] sm:$0xff] %v834_v21 }
 0x1ea   : > { %v857_v22 = vld [vmem:[#allocation2 + $0x30] sm:$0xff]  ;;  %v1052_v23 = vld [vmem:[%s1401_s4] ss:$0 sm:$0xff]  ;;  %v859_v27 = vld [vmem:[#allocation2 + $0x58] sm:$0xff] }
 0x1eb   : > { %v858_v24 = vld [vmem:[#allocation2] sm:$0xff]  ;;  %v880_v25 = vadd.f32 %v1052_v23, %v857_v22  ;;  %v860_v28 = vld [vmem:[#allocation2 + $0x18] sm:$0xff]  ;;  %v861_v29 = vld [vmem:[#allocation2 + $0x50] sm:$0xff]  ;;  %v882_v30 = vadd.f32 %v1052_v23, %v859_v27 }
 0x1ec   : > { %v881_v26 = vadd.f32 %v1052_v23, %v858_v24  ;;  %v883_v31 = vadd.f32 %v1052_v23, %v860_v28  ;;  %v884_v32 = vadd.f32 %v1052_v23, %v861_v29  ;;  %v862_v33 = vld [vmem:[#allocation2 + $0x68] sm:$0xff]  ;;  %v865_v39 = vld [vmem:[#allocation2 + $0x40] sm:$0xff]  ;;  %v867_v41 = vld [vmem:[#allocation2 + $0x10] sm:$0xff] }
 0x1ed   : > { %v863_v34 = vld [vmem:[#allocation2 + $0x8] sm:$0xff]  ;;  %896 = vst [vmem:[%s1402_s5] sm:$0xff] %v880_v25  ;;  %v885_v36 = vadd.f32 %v1052_v23, %v862_v33  ;;  %v866_v40 = vld [vmem:[#allocation2 + $0x20] sm:$0xff]  ;;  %898 = vst [vmem:[%s1402_s5 + $0x10] sm:$0xff] %v882_v30  ;;  %v888_v42 = vadd.f32 %v1052_v23, %v865_v39  ;;  %v890_v44 = vadd.f32 %v1052_v23, %v867_v41 }
 0x1ee   : > { %v864_v35 = vld [vmem:[#allocation2 + $0x48] sm:$0xff]  ;;  %897 = vst [vmem:[%s1402_s5 + $0x8] sm:$0xff] %v881_v26  ;;  %v886_v37 = vadd.f32 %v1052_v23, %v863_v34  ;;  %899 = vst [vmem:[%s1402_s5 + $0x18] sm:$0xff] %v883_v31  ;;  %v889_v43 = vadd.f32 %v1052_v23, %v866_v40  ;;  %v868_v45 = vld [vmem:[#allocation2 + $0x38] sm:$0xff] }
 0x1ef   : > { %v887_v38 = vadd.f32 %v1052_v23, %v864_v35  ;;  %900 = vst [vmem:[%s1402_s5 + $0x20] sm:$0xff] %v884_v32  ;;  %v869_v46 = vld [vmem:[#allocation2 + $0x60] sm:$0xff]  ;;  %901 = vst [vmem:[%s1402_s5 + $0x28] sm:$0xff] %v885_v36  ;;  %v891_v48 = vadd.f32 %v1052_v23, %v868_v45  ;;  %v871_v51 = vld [vmem:[#allocation2 + $0x78] sm:$0xff] }
 0x1f0   : > { %v870_v47 = vld [vmem:[#allocation2 + $0x70] sm:$0xff]  ;;  %902 = vst [vmem:[%s1402_s5 + $0x30] sm:$0xff] %v886_v37  ;;  %v892_v49 = vadd.f32 %v1052_v23, %v869_v46  ;;  %v872_v52 = vld [vmem:[#allocation2 + $0x28] sm:$0xff]  ;;  %904 = vst [vmem:[%s1402_s5 + $0x40] sm:$0xff] %v888_v42  ;;  %v894_v53 = vadd.f32 %v1052_v23, %v871_v51 }
 0x1f1   : > { %903 = vst [vmem:[%s1402_s5 + $0x38] sm:$0xff] %v887_v38  ;;  %v893_v50 = vadd.f32 %v1052_v23, %v870_v47  ;;  %905 = vst [vmem:[%s1402_s5 + $0x48] sm:$0xff] %v889_v43  ;;  %v895_v54 = vadd.f32 %v1052_v23, %v872_v52 }
 0x1f2   : > { %906 = vst [vmem:[%s1402_s5 + $0x50] sm:$0xff] %v890_v44  ;;  %907 = vst [vmem:[%s1402_s5 + $0x58] sm:$0xff] %v891_v48 }
 0x1f3   : > { %908 = vst [vmem:[%s1402_s5 + $0x60] sm:$0xff] %v892_v49  ;;  %909 = vst [vmem:[%s1402_s5 + $0x68] sm:$0xff] %v893_v50 }
 0x1f4   : > { %910 = vst [vmem:[%s1402_s5 + $0x70] sm:$0xff] %v894_v53  ;;  %911 = vst [vmem:[%s1402_s5 + $0x78] sm:$0xff] %v895_v54 }
 0x1f5 PF: > { %s15_s20 = sadd.s32 1, %s1223_s20   ;;  %s1403_s18 = smov %s1219_s19 }
 0x1f6   : > { %p12_p7 = scmp.ge.s32.totalorder %s15_s20, 4   ;;  %s1404_s19 = smov %s1406_s21 }
 0x1f8   :  { %14 = sbr.rel (!%p12_p7) target bundleno = 2 (0x2), region = 87 }

// kernel: rgcn_forward.2
= control target key start
LH: loop header
LB: loop body
LE: loop exit
PB: predicated region body
PF: predicated region fallthrough
CT: control target
= control target key end

     0   :  { %s1305_s18 = smov 0   ;;  %s1307_s19 = smov 0   ;;  %s1445_s0 = inlined_call_operand.vmem [shape: s8[2,128,128], index: 0, kind: input, shape index: {}]   ;;  %s1446_s1 = inlined_call_operand.vmem [shape: bf16[2,128,128], index: 1, kind: input, shape index: {}]   ;;  %s1447_s2 = inlined_call_operand.vmem [shape: bf16[2,128,128], index: 2, kind: input, shape index: {}]   ;;  %s1448_s3 = inlined_call_operand.vmem [shape: f32[2,128,1], index: 3, kind: input, shape index: {}]   ;;  %s1449_s4 = inlined_call_operand.vmem [shape: f32[1,128], index: 4, kind: input, shape index: {}]   ;;  %s1450_s5 = inlined_call_operand.vmem [shape: f32[128,128], index: 5, kind: output, shape index: {}]  }
   0x1   :  { %s1309_s20 = smov 0  }
   0x2 LB: > { %s24_s21 = sadd.s32 1, %s1267_s19  ;;  %p1041_p0 = scmp.ge.s32.totalorder %s1271_s20, 1  ;;  %s1271_s20 = sphi %s1309_s20, %s15_s20   ;;  %s1267_s19 = sphi %s1307_s19, %s1452_s19   ;;  %s1263_s18 = sphi %s1305_s18, %s1451_s18  }
   0x3   : > { %p25_p1 = scmp.ge.s32.totalorder %s24_s21, 2  ;;  %p243_p2 = scmp.lt.s32.totalorder %s1271_s20, 3 }
   0x5   : > { %s1454_s21 = smov (%p25_p1, %s24_s21), 0  ;;  %p244_p3 = pnand %p1041_p0, %p243_p2 }
   0x6   : > { %p295_p4 = scmp.lt.s32.totalorder (!%p244_p3), %s1263_s18, 1  ;;  %p1050_p5 = scmp.ne.s32.totalorder (!%p244_p3), %s1263_s18, 0 }
   0x7   : > { %247 = sbr.rel (%p244_p3) target bundleno = 523 (0x20b), region = 40 }
   0xc   : > { %s296_s22 = scalar_select %p295_p4, %s1263_s18, 1 }
   0xd   : > { %334 = sbr.rel (%p1050_p5) target bundleno = 27 (0x1b), region = 44 }
   0xe   : > { %s1073_s23 = sshll.u32 %s296_s22, 5  ;;  %s1074_s24 = sshll.u32 %s296_s22, 6 }
   0xf   : > { %s1330_s27 = scalar_lea.vmem %s1445_s0, %s1073_s23  ;;  %s1335_s30 = scalar_lea.vmem %s1446_s1, %s1074_s24 }
  0x10   : > { %s1340_s8 = scalar_lea.vmem %s1447_s2, %s1074_s24  ;;  %s1076_s9 = sshll.u32 %s296_s22, 7 }
  0x11   : > { %s1345_s12 = scalar_lea.vmem %s1448_s3, %s1076_s9 }
  0x12   : > { %v1273_v0 = vmov 0.0  }
  0x13   : > { %335 = vst [vmem:[#allocation2 + $0x30] sm:$0xff] %v1273_v0  ;;  %336 = vst [vmem:[#allocation2] sm:$0xff] %v1273_v0 }
  0x14   : > { %337 = vst [vmem:[#allocation2 + $0x58] sm:$0xff] %v1273_v0  ;;  %338 = vst [vmem:[#allocation2 + $0x18] sm:$0xff] %v1273_v0 }
  0x15   : > { %339 = vst [vmem:[#allocation2 + $0x50] sm:$0xff] %v1273_v0  ;;  %340 = vst [vmem:[#allocation2 + $0x68] sm:$0xff] %v1273_v0 }
  0x16   : > { %341 = vst [vmem:[#allocation2 + $0x8] sm:$0xff] %v1273_v0  ;;  %342 = vst [vmem:[#allocation2 + $0x48] sm:$0xff] %v1273_v0 }
  0x17   : > { %343 = vst [vmem:[#allocation2 + $0x40] sm:$0xff] %v1273_v0  ;;  %344 = vst [vmem:[#allocation2 + $0x20] sm:$0xff] %v1273_v0 }
  0x18   : > { %345 = vst [vmem:[#allocation2 + $0x10] sm:$0xff] %v1273_v0  ;;  %346 = vst [vmem:[#allocation2 + $0x38] sm:$0xff] %v1273_v0 }
  0x19   : > { %347 = vst [vmem:[#allocation2 + $0x60] sm:$0xff] %v1273_v0  ;;  %348 = vst [vmem:[#allocation2 + $0x70] sm:$0xff] %v1273_v0 }
  0x1a   : > { %349 = vst [vmem:[#allocation2 + $0x78] sm:$0xff] %v1273_v0  ;;  %350 = vst [vmem:[#allocation2 + $0x28] sm:$0xff] %v1273_v0 }
  0x1b PF: > { %v1201_v1 = vld [vmem:[%s1335_s30 + $0x38] sm:$0xff]   ;;  %v1202_v2 = vld [vmem:[%s1335_s30 + $0x30] sm:$0xff]   ;;  %v1203_v3 = vld [vmem:[%s1335_s30 + $0x28] sm:$0xff]   ;;  %v1274_v31 = vmov 0   ;;  %p1067_p6 = scmp.ne.s32.totalorder %s1263_s18, 1 }
  0x1c   : > { %1109 = vmatprep.subr.bf16.mxu0 %v1201_v1  ;;  %v1204_v4 = vld [vmem:[%s1335_s30 + $0x20] sm:$0xff]   ;;  %v1209_v7 = vld [vmem:[%s1340_s8 + $0x38] sm:$0xff]   ;;  %v1210_v8 = vld [vmem:[%s1340_s8 + $0x30] sm:$0xff]   ;;  %1200 = vset.pattern.permute.xlu1 %v1274_v31 }
  0x1d   : > { %1110 = vmatpush3.bf16.msra.mxu0 %v1201_v1  ;;  %v351_v5 = vld [vmem:[%s1330_s27] sm:$0xff]  ;;  %v1205_v9 = vld [vmem:[%s1335_s30 + $0x18] sm:$0xff]   ;;  %1141 = vmatprep.subr.bf16.mxu1 %v1209_v7  ;;  %v1211_v10 = vld [vmem:[%s1340_s8 + $0x28] sm:$0xff]  }
  0x1e   : > { %1111 = vmatprep.subr.bf16.mxu0 %v1202_v2  ;;  %v355_v6 = vunpack.c.l.s8.bf16 %v351_v5  ;;  %1142 = vmatpush3.bf16.msra.mxu1 %v1209_v7  ;;  %v1206_v11 = vld [vmem:[%s1335_s30 + $0x10] sm:$0xff]   ;;  %v1212_v12 = vld [vmem:[%s1340_s8 + $0x20] sm:$0xff]   ;;  %v1207_v13 = vld [vmem:[%s1335_s30 + $0x8] sm:$0xff]   ;;  %v356_v18 = vunpack.c.h.s8.bf16 %v351_v5 }
  0x1f   : > { %1143 = vmatprep.subr.bf16.mxu1 %v1210_v8  ;;  %v1213_v14 = vld [vmem:[%s1340_s8 + $0x18] sm:$0xff]   ;;  %v1208_v15 = vld [vmem:[%s1335_s30] sm:$0xff]   ;;  %v1214_v16 = vld [vmem:[%s1340_s8 + $0x10] sm:$0xff]   ;;  %1199 = vset.pattern.permute.xlu0 %v1274_v31 }
  0x20   : > { %1125 = vmatprep.mubr.bf16.mxu0 %v355_v6  ;;  %v352_v17 = vld [vmem:[%s1330_s27 + $0x8] sm:$0xff]  ;;  %v353_v20 = vld [vmem:[%s1330_s27 + $0x10] sm:$0xff]  ;;  %v354_v23 = vld [vmem:[%s1330_s27 + $0x18] sm:$0xff] }
  0x21   : > { %1112 = vmatpush3.bf16.msra.mxu0 %v1202_v2  ;;  %v357_v19 = vunpack.c.l.s8.bf16 %v352_v17  ;;  %v358_v21 = vunpack.c.h.s8.bf16 %v352_v17  ;;  %v359_v22 = vunpack.c.l.s8.bf16 %v353_v20  ;;  %v360_v24 = vunpack.c.h.s8.bf16 %v353_v20  ;;  %v1215_v27 = vld [vmem:[%s1340_s8 + $0x8] sm:$0xff]   ;;  %v1216_v28 = vld [vmem:[%s1340_s8] sm:$0xff]   ;;  %v711_v29 = vld [vmem:[%s1345_s12 + $0x10] sm:$0xff] }
  0x22   : > { %1113 = vmatprep.subr.bf16.mxu0 %v1203_v3  ;;  %1144 = vmatpush3.bf16.msra.mxu1 %v1210_v8  ;;  %v361_v25 = vunpack.c.l.s8.bf16 %v354_v23  ;;  %v362_v26 = vunpack.c.h.s8.bf16 %v354_v23  ;;  %v709_v30 = vld [vmem:[%s1345_s12] sm:$0xff]  ;;  %v712_v32 = vld [vmem:[%s1345_s12 + $0x18] sm:$0xff]  ;;  %v710_v33 = vld [vmem:[%s1345_s12 + $0x8] sm:$0xff] }
  0x23   : > { %1145 = vmatprep.subr.bf16.mxu1 %v1211_v10  ;;  %737 = vperm.xlu1 %1200, %v711_v29   ;;  %v714_v34 = vld [vmem:[%s1345_s12 + $0x28] sm:$0xff]  ;;  %v713_v35 = vld [vmem:[%s1345_s12 + $0x20] sm:$0xff]  ;;  %v716_v36 = vld [vmem:[%s1345_s12 + $0x38] sm:$0xff] }
  0x24   : > { %727 = vperm.xlu0 %1199, %v709_v30   ;;  %v715_v37 = vld [vmem:[%s1345_s12 + $0x30] sm:$0xff]  ;;  %v718_v38 = vld [vmem:[%s1345_s12 + $0x48] sm:$0xff]  ;;  %v717_v39 = vld [vmem:[%s1345_s12 + $0x40] sm:$0xff] }
  0x25   : > { %1114 = vmatpush3.bf16.msra.mxu0 %v1203_v3  ;;  %v720_v40 = vld [vmem:[%s1345_s12 + $0x58] sm:$0xff]  ;;  %v719_v41 = vld [vmem:[%s1345_s12 + $0x50] sm:$0xff]  ;;  %v722_v42 = vld [vmem:[%s1345_s12 + $0x68] sm:$0xff] }
  0x26   : > { %1115 = vmatprep.subr.bf16.mxu0 %v1204_v4  ;;  %1146 = vmatpush3.bf16.msra.mxu1 %v1211_v10  ;;  %v721_v43 = vld [vmem:[%s1345_s12 + $0x60] sm:$0xff]  ;;  %v724_v44 = vld [vmem:[%s1345_s12 + $0x78] sm:$0xff]  ;;  %v723_v45 = vld [vmem:[%s1345_s12 + $0x70] sm:$0xff] }
  0x27   : > { %1147 = vmatprep.subr.bf16.mxu1 %v1212_v12  ;;  %742 = vperm.xlu1 %1200, %v712_v32   ;;  %v693_v17 = vld [vmem:[#allocation2 + $0x30] sm:$0xff]  ;;  %v699_v31 = vld [vmem:[#allocation2 + $0x8] sm:$0xff] }
  0x28   : > { %732 = vperm.xlu0 %1199, %v710_v33  }
  0x29   : > { %1116 = vmatpush3.bf16.msra.mxu0 %v1204_v4 }
  0x2a   : > { %1117 = vmatprep.subr.bf16.mxu0 %v1205_v9  ;;  %1148 = vmatpush3.bf16.msra.mxu1 %v1212_v12 }
  0x2b   : > { %1149 = vmatprep.subr.bf16.mxu1 %v1213_v14  ;;  %752 = vperm.xlu1 %1200, %v714_v34  }
  0x2c   : > { %747 = vperm.xlu0 %1199, %v713_v35  }
  0x2d   : > { %1118 = vmatpush3.bf16.msra.mxu0 %v1205_v9 }
  0x2e   : > { %1119 = vmatprep.subr.bf16.mxu0 %v1206_v11  ;;  %1150 = vmatpush3.bf16.msra.mxu1 %v1213_v14  ;;  %v695_v14 = vld [vmem:[#allocation2 + $0x58] sm:$0xff] }
  0x2f   : > { %1151 = vmatprep.subr.bf16.mxu1 %v1214_v16  ;;  %762 = vperm.xlu1 %1200, %v716_v36   ;;  %v697_v36 = vld [vmem:[#allocation2 + $0x50] sm:$0xff] }
  0x30   : > { %757 = vperm.xlu0 %1199, %v715_v37  }
  0x31   : > { %1120 = vmatpush3.bf16.msra.mxu0 %v1206_v11 }
  0x32   : > { %1121 = vmatprep.subr.bf16.mxu0 %v1207_v13  ;;  %1152 = vmatpush3.bf16.msra.mxu1 %v1214_v16 }
  0x33   : > { %1153 = vmatprep.subr.bf16.mxu1 %v1215_v27  ;;  %772 = vperm.xlu1 %1200, %v718_v38  }
  0x34   : > { %767 = vperm.xlu0 %1199, %v717_v39  }
  0x35   : > { %1122 = vmatpush3.bf16.msra.mxu0 %v1207_v13 }
  0x36   : > { %1123 = vmatprep.subr.bf16.mxu0 %v1208_v15  ;;  %1154 = vmatpush3.bf16.msra.mxu1 %v1215_v27  ;;  %v694_v27 = vld [vmem:[#allocation2] sm:$0xff] }
  0x37   : > { %1155 = vmatprep.subr.bf16.mxu1 %v1216_v28  ;;  %782 = vperm.xlu1 %1200, %v720_v40  }
  0x38   : > { %777 = vperm.xlu0 %1199, %v719_v41   ;;  %v700_v41 = vld [vmem:[#allocation2 + $0x48] sm:$0xff] }
  0x39   : > { %1124 = vmatpush3.bf16.msra.mxu0 %v1208_v15 }
  0x3a   : > { %1156 = vmatpush3.bf16.msra.mxu1 %v1216_v28 }
  0x3b   : > { %792 = vperm.xlu1 %1200, %v722_v42  }
  0x3c   : > { %1126 = vmatmul.mubr.bf16.vlgmr.msra.gmra.mxu0 %v356_v18  ;;  %787 = vperm.xlu0 %1199, %v721_v43  }
  0x3d   : > { %1129 = vmatprep.mubr.bf16.mxu0 %v357_v19 }
  0x3f   : > { %802 = vperm.xlu1 %1200, %v724_v44  }
  0x40   : > { %797 = vperm.xlu0 %1199, %v723_v45   ;;  %v698_v45 = vld [vmem:[#allocation2 + $0x68] sm:$0xff] }
  0x44   : > { %1130 = vmatmul.mubr.bf16.gmra.mxu0 %v358_v21 }
  0x45   : > { %1133 = vmatprep.mubr.bf16.mxu0 %v359_v22  ;;  %v696_v22 = vld [vmem:[#allocation2 + $0x18] sm:$0xff] }
  0x4c   : > { %1134 = vmatmul.mubr.bf16.gmra.mxu0 %v360_v24 }
  0x4d   : > { %1137 = vmatprep.mubr.bf16.mxu0 %v361_v25 }
  0x54   : > { %1138 = vmatmul.mubr.bf16.gmra.mxu0 %v362_v26 }
  0x9e   : > { %v738_v7 = vpop.permute.xlu1 %737 }
  0x9f   : > { %v728_v6 = vpop.permute.xlu0 %727 }
  0xa2   : > { %v743_v9 = vpop.permute.xlu1 %742 }
  0xa3   : > { %v733_v8 = vpop.permute.xlu0 %732 }
  0xa6   : > { %v753_v11 = vpop.permute.xlu1 %752 }
  0xa7   : > { %v748_v10 = vpop.permute.xlu0 %747 }
  0xaa   : > { %v763_v20 = vpop.permute.xlu1 %762 }
  0xab   : > { %v758_v12 = vpop.permute.xlu0 %757 }
  0xae   : > { %v773_v34 = vpop.permute.xlu1 %772 }
  0xaf   : > { %v768_v25 = vpop.permute.xlu0 %767 }
  0xb3   : > { %v778_v39 = vpop.permute.xlu0 %777 }
  0xfc   : > { %v1127_v46 = vpop.f32.mrf.mxu0 }
  0xfe   : > { %v461_v47 = vpop.f32.mrf.mxu0 }
 0x100   : > { %v1128_v48 = vpop.f32.mrf.mxu0 }
 0x101   : > { %v525_v51 = vpack.c.bf16 %v1128_v48, %v1127_v46  ;;  %v783_v48 = vpop.permute.xlu1 %782 }
 0x102   : > { %v464_v49 = vpop.f32.mrf.mxu0 }
 0x103   : > { %v524_v50 = vpack.c.bf16 %v464_v49, %v461_v47 }
 0x104   : > { %v1131_v52 = vpop.f32.mrf.mxu0 }
 0x105   : > { %1157 = vmatprep.mubr.bf16.mxu1 %v524_v50  ;;  %v703_v50 = vld [vmem:[#allocation2 + $0x10] sm:$0xff] }
 0x106   : > { %v477_v53 = vpop.f32.mrf.mxu0  ;;  %1158 = vmatmul.mubr.bf16.vlgmr.msra.gmra.mxu1 %v525_v51 }
 0x108   : > { %v1132_v54 = vpop.f32.mrf.mxu0 }
 0x109   : > { %v527_v57 = vpack.c.bf16 %v1132_v54, %v1131_v52 }
 0x10a   : > { %v480_v55 = vpop.f32.mrf.mxu0 }
 0x10b   : > { %v526_v56 = vpack.c.bf16 %v480_v55, %v477_v53  ;;  %v788_v53 = vpop.permute.xlu0 %787  ;;  %v701_v55 = vld [vmem:[#allocation2 + $0x40] sm:$0xff] }
 0x10c   : > { %v1135_v58 = vpop.f32.mrf.mxu0 }
 0x10d   : > { %1161 = vmatprep.mubr.bf16.mxu1 %v526_v56 }
 0x10e   : > { %v493_v59 = vpop.f32.mrf.mxu0  ;;  %1162 = vmatmul.mubr.bf16.gmra.mxu1 %v527_v57 }
 0x110   : > { %v1136_v60 = vpop.f32.mrf.mxu0 }
 0x111   : > { %v529_v63 = vpack.c.bf16 %v1136_v60, %v1135_v58 }
 0x112   : > { %v496_v61 = vpop.f32.mrf.mxu0 }
 0x113   : > { %v528_v62 = vpack.c.bf16 %v496_v61, %v493_v59  ;;  %v704_v59 = vld [vmem:[#allocation2 + $0x38] sm:$0xff] }
 0x114   : > { %v1139_v0 = vpop.f32.mrf.mxu0 }
 0x115   : > { %1165 = vmatprep.mubr.bf16.mxu1 %v528_v62  ;;  %v793_v62 = vpop.permute.xlu1 %792 }
 0x116   : > { %v509_v1 = vpop.f32.mrf.mxu0  ;;  %1166 = vmatmul.mubr.bf16.gmra.mxu1 %v529_v63 }
 0x118   : > { %v1140_v2 = vpop.f32.mrf.mxu0 }
 0x119   : > { %v531_v5 = vpack.c.bf16 %v1140_v2, %v1139_v0  ;;  %v702_v0 = vld [vmem:[#allocation2 + $0x20] sm:$0xff] }
 0x11a   : > { %v512_v3 = vpop.f32.mrf.mxu0 }
 0x11b   : > { %v530_v4 = vpack.c.bf16 %v512_v3, %v509_v1  ;;  %v798_v3 = vpop.permute.xlu0 %797 }
 0x11d   : > { %1169 = vmatprep.mubr.bf16.mxu1 %v530_v4 }
 0x11e   : > { %1170 = vmatmul.mubr.bf16.gmra.mxu1 %v531_v5  ;;  %v707_v5 = vld [vmem:[#allocation2 + $0x78] sm:$0xff] }
 0x1c6   : > { %v1159_v13 = vpop.f32.mrf.mxu1 }
 0x1c7   : > { %v807_v15 = vmul.f32 %v1159_v13, %v738_v7 }
 0x1c8   : > { %v630_v16 = vpop.f32.mrf.mxu1 }
 0x1c9   : > { %v823_v18 = vadd.f32 %v807_v15, %v695_v14  ;;  %v805_v19 = vmul.f32 %v728_v6, %v630_v16  ;;  %v708_v14 = vld [vmem:[#allocation2 + $0x28] sm:$0xff] }
 0x1ca   : > { %v1160_v21 = vpop.f32.mrf.mxu1 }
 0x1cb   : > { %839 = vst [vmem:[#allocation2 + $0x58] sm:$0xff] %v823_v18  ;;  %v821_v23 = vadd.f32 %v805_v19, %v693_v17  ;;  %v808_v24 = vmul.f32 %v1160_v21, %v743_v9  ;;  %v705_v9 = vld [vmem:[#allocation2 + $0x60] sm:$0xff]  ;;  %v706_v18 = vld [vmem:[#allocation2 + $0x70] sm:$0xff] }
 0x1cc   : > { %v633_v26 = vpop.f32.mrf.mxu1 }
 0x1cd   : > { %837 = vst [vmem:[#allocation2 + $0x30] sm:$0xff] %v821_v23  ;;  %v824_v28 = vadd.f32 %v808_v24, %v696_v22  ;;  %v806_v29 = vmul.f32 %v733_v8, %v633_v26 }
 0x1ce   : > { %v1163_v30 = vpop.f32.mrf.mxu1 }
 0x1cf   : > { %840 = vst [vmem:[#allocation2 + $0x18] sm:$0xff] %v824_v28  ;;  %v822_v32 = vadd.f32 %v806_v29, %v694_v27  ;;  %v811_v33 = vmul.f32 %v1163_v30, %v758_v12  ;;  %v803_v12 = vpop.permute.xlu1 %802 }
 0x1d0   : > { %v646_v35 = vpop.f32.mrf.mxu1 }
 0x1d1   : > { %838 = vst [vmem:[#allocation2] sm:$0xff] %v822_v32  ;;  %v827_v37 = vadd.f32 %v811_v33, %v699_v31  ;;  %v809_v38 = vmul.f32 %v748_v10, %v646_v35 }
 0x1d2   : > { %v1164_v40 = vpop.f32.mrf.mxu1 }
 0x1d3   : > { %843 = vst [vmem:[#allocation2 + $0x8] sm:$0xff] %v827_v37  ;;  %v825_v42 = vadd.f32 %v809_v38, %v697_v36  ;;  %v812_v43 = vmul.f32 %v1164_v40, %v763_v20 }
 0x1d4   : > { %v649_v44 = vpop.f32.mrf.mxu1 }
 0x1d5   : > { %841 = vst [vmem:[#allocation2 + $0x50] sm:$0xff] %v825_v42  ;;  %v828_v46 = vadd.f32 %v812_v43, %v700_v41  ;;  %v810_v47 = vmul.f32 %v753_v11, %v649_v44 }
 0x1d6   : > { %v1167_v49 = vpop.f32.mrf.mxu1 }
 0x1d7   : > { %844 = vst [vmem:[#allocation2 + $0x48] sm:$0xff] %v828_v46  ;;  %v826_v51 = vadd.f32 %v810_v47, %v698_v45  ;;  %v815_v52 = vmul.f32 %v1167_v49, %v778_v39 }
 0x1d8   : > { %v662_v54 = vpop.f32.mrf.mxu1 }
 0x1d9   : > { %842 = vst [vmem:[#allocation2 + $0x68] sm:$0xff] %v826_v51  ;;  %v831_v56 = vadd.f32 %v815_v52, %v703_v50  ;;  %v813_v57 = vmul.f32 %v768_v25, %v662_v54 }
 0x1da   : > { %v1168_v58 = vpop.f32.mrf.mxu1 }
 0x1db   : > { %847 = vst [vmem:[#allocation2 + $0x10] sm:$0xff] %v831_v56  ;;  %v829_v60 = vadd.f32 %v813_v57, %v701_v55  ;;  %v816_v61 = vmul.f32 %v1168_v58, %v783_v48 }
 0x1dc   : > { %v665_v63 = vpop.f32.mrf.mxu1 }
 0x1dd   : > { %845 = vst [vmem:[#allocation2 + $0x40] sm:$0xff] %v829_v60  ;;  %v832_v1 = vadd.f32 %v816_v61, %v704_v59  ;;  %v814_v2 = vmul.f32 %v773_v34, %v665_v63 }
 0x1de   : > { %v1171_v4 = vpop.f32.mrf.mxu1 }
 0x1df   : > { %848 = vst [vmem:[#allocation2 + $0x38] sm:$0xff] %v832_v1  ;;  %v830_v6 = vadd.f32 %v814_v2, %v702_v0  ;;  %v819_v7 = vmul.f32 %v1171_v4, %v798_v3 }
 0x1e0   : > { %v678_v8 = vpop.f32.mrf.mxu1 }
 0x1e1   : > { %846 = vst [vmem:[#allocation2 + $0x20] sm:$0xff] %v830_v6  ;;  %v835_v10 = vadd.f32 %v819_v7, %v707_v5  ;;  %v817_v11 = vmul.f32 %v788_v53, %v678_v8 }
 0x1e2   : > { %v1172_v13 = vpop.f32.mrf.mxu1 }
 0x1e3   : > { %851 = vst [vmem:[#allocation2 + $0x78] sm:$0xff] %v835_v10  ;;  %v833_v15 = vadd.f32 %v817_v11, %v705_v9  ;;  %v820_v16 = vmul.f32 %v1172_v13, %v803_v12 }
 0x1e4   : > { %v681_v17 = vpop.f32.mrf.mxu1 }
 0x1e5   : > { %849 = vst [vmem:[#allocation2 + $0x60] sm:$0xff] %v833_v15  ;;  %v836_v19 = vadd.f32 %v820_v16, %v708_v14  ;;  %v818_v20 = vmul.f32 %v793_v62, %v681_v17  ;;  %856 = sbr.rel (%p1067_p6) target bundleno = 523 (0x20b), region = 48 }
 0x1e7   : > { %852 = vst [vmem:[#allocation2 + $0x28] sm:$0xff] %v836_v19  ;;  %v834_v21 = vadd.f32 %v818_v20, %v706_v18 }
 0x1e9   : > { %850 = vst [vmem:[#allocation2 + $0x70] sm:$0xff] %v834_v21 }
 0x1ea   : > { %v857_v22 = vld [vmem:[#allocation2 + $0x30] sm:$0xff]  ;;  %v1068_v23 = vld [vmem:[%s1449_s4] ss:$0 sm:$0xff]  ;;  %v859_v27 = vld [vmem:[#allocation2 + $0x58] sm:$0xff] }
 0x1eb   : > { %v858_v24 = vld [vmem:[#allocation2] sm:$0xff]  ;;  %v880_v25 = vadd.f32 %v1068_v23, %v857_v22  ;;  %v860_v28 = vld [vmem:[#allocation2 + $0x18] sm:$0xff]  ;;  %v861_v29 = vld [vmem:[#allocation2 + $0x50] sm:$0xff]  ;;  %v882_v30 = vadd.f32 %v1068_v23, %v859_v27 }
 0x1ec   : > { %v881_v26 = vadd.f32 %v1068_v23, %v858_v24  ;;  %v883_v31 = vadd.f32 %v1068_v23, %v860_v28  ;;  %v862_v32 = vld [vmem:[#allocation2 + $0x68] sm:$0xff]  ;;  %v884_v34 = vadd.f32 %v1068_v23, %v861_v29  ;;  %v865_v37 = vld [vmem:[#allocation2 + $0x40] sm:$0xff]  ;;  %v867_v41 = vld [vmem:[#allocation2 + $0x10] sm:$0xff] }
 0x1ed   : > { %v863_v33 = vld [vmem:[#allocation2 + $0x8] sm:$0xff]  ;;  %1217 = vtanh.f32 %v880_v25  ;;  %v885_v36 = vadd.f32 %v1068_v23, %v862_v32  ;;  %v866_v39 = vld [vmem:[#allocation2 + $0x20] sm:$0xff]  ;;  %v888_v42 = vadd.f32 %v1068_v23, %v865_v37  ;;  %v868_v43 = vld [vmem:[#allocation2 + $0x38] sm:$0xff]  ;;  %v890_v46 = vadd.f32 %v1068_v23, %v867_v41 }
 0x1ee   : > { %v864_v35 = vld [vmem:[#allocation2 + $0x48] sm:$0xff]  ;;  %1219 = vtanh.f32 %v881_v26  ;;  %v886_v38 = vadd.f32 %v1068_v23, %v863_v33  ;;  %v889_v44 = vadd.f32 %v1068_v23, %v866_v39  ;;  %v869_v45 = vld [vmem:[#allocation2 + $0x60] sm:$0xff]  ;;  %v891_v48 = vadd.f32 %v1068_v23, %v868_v43  ;;  %v871_v49 = vld [vmem:[#allocation2 + $0x78] sm:$0xff] }
 0x1ef   : > { %1221 = vtanh.f32 %v882_v30  ;;  %v887_v40 = vadd.f32 %v1068_v23, %v864_v35  ;;  %v892_v50 = vadd.f32 %v1068_v23, %v869_v45  ;;  %v872_v51 = vld [vmem:[#allocation2 + $0x28] sm:$0xff]  ;;  %v894_v53 = vadd.f32 %v1068_v23, %v871_v49 }
 0x1f0   : > { %1223 = vtanh.f32 %v883_v31  ;;  %v870_v47 = vld [vmem:[#allocation2 + $0x70] sm:$0xff]  ;;  %v895_v54 = vadd.f32 %v1068_v23, %v872_v51 }
 0x1f1   : > { %1225 = vtanh.f32 %v884_v34  ;;  %v893_v52 = vadd.f32 %v1068_v23, %v870_v47 }
 0x1f2   : > { %1227 = vtanh.f32 %v885_v36 }
 0x1f3   : > { %1229 = vtanh.f32 %v886_v38 }
 0x1f4   : > { %1231 = vtanh.f32 %v887_v40 }
 0x1f5   : > { %1233 = vtanh.f32 %v888_v42 }
 0x1f6   : > { %1235 = vtanh.f32 %v889_v44 }
 0x1f7   : > { %1237 = vtanh.f32 %v890_v46 }
 0x1f8   : > { %1239 = vtanh.f32 %v891_v48 }
 0x1f9   : > { %1241 = vtanh.f32 %v892_v50 }
 0x1fa   : > { %v1218_v55 = vpop.eup %1217  ;;  %1243 = vtanh.f32 %v893_v52 }
 0x1fb   : > { %v1220_v56 = vpop.eup %1219  ;;  %912 = vst [vmem:[%s1450_s5] sm:$0xff] %v1218_v55  ;;  %1245 = vtanh.f32 %v894_v53 }
 0x1fc   : > { %v1222_v57 = vpop.eup %1221  ;;  %913 = vst [vmem:[%s1450_s5 + $0x8] sm:$0xff] %v1220_v56  ;;  %1247 = vtanh.f32 %v895_v54 }
 0x1fd   : > { %v1224_v58 = vpop.eup %1223  ;;  %914 = vst [vmem:[%s1450_s5 + $0x10] sm:$0xff] %v1222_v57 }
 0x1fe   : > { %v1226_v59 = vpop.eup %1225  ;;  %915 = vst [vmem:[%s1450_s5 + $0x18] sm:$0xff] %v1224_v58 }
 0x1ff   : > { %v1228_v60 = vpop.eup %1227  ;;  %916 = vst [vmem:[%s1450_s5 + $0x20] sm:$0xff] %v1226_v59 }
 0x200   : > { %v1230_v61 = vpop.eup %1229  ;;  %917 = vst [vmem:[%s1450_s5 + $0x28] sm:$0xff] %v1228_v60 }
 0x201   : > { %v1232_v62 = vpop.eup %1231  ;;  %918 = vst [vmem:[%s1450_s5 + $0x30] sm:$0xff] %v1230_v61 }
 0x202   : > { %v1234_v63 = vpop.eup %1233  ;;  %919 = vst [vmem:[%s1450_s5 + $0x38] sm:$0xff] %v1232_v62 }
 0x203   : > { %v1236_v0 = vpop.eup %1235  ;;  %920 = vst [vmem:[%s1450_s5 + $0x40] sm:$0xff] %v1234_v63 }
 0x204   : > { %v1238_v1 = vpop.eup %1237  ;;  %921 = vst [vmem:[%s1450_s5 + $0x48] sm:$0xff] %v1236_v0 }
 0x205   : > { %v1240_v2 = vpop.eup %1239  ;;  %922 = vst [vmem:[%s1450_s5 + $0x50] sm:$0xff] %v1238_v1 }
 0x206   : > { %v1242_v3 = vpop.eup %1241  ;;  %923 = vst [vmem:[%s1450_s5 + $0x58] sm:$0xff] %v1240_v2 }
 0x207   : > { %v1244_v4 = vpop.eup %1243  ;;  %924 = vst [vmem:[%s1450_s5 + $0x60] sm:$0xff] %v1242_v3 }
 0x208   : > { %v1246_v5 = vpop.eup %1245  ;;  %925 = vst [vmem:[%s1450_s5 + $0x68] sm:$0xff] %v1244_v4 }
 0x209   : > { %v1248_v6 = vpop.eup %1247  ;;  %926 = vst [vmem:[%s1450_s5 + $0x70] sm:$0xff] %v1246_v5 }
 0x20a   : > { %927 = vst [vmem:[%s1450_s5 + $0x78] sm:$0xff] %v1248_v6 }
 0x20b PF: > { %s15_s20 = sadd.s32 1, %s1271_s20   ;;  %s1451_s18 = smov %s1267_s19 }
 0x20c   : > { %p12_p7 = scmp.ge.s32.totalorder %s15_s20, 4   ;;  %s1452_s19 = smov %s1454_s21 }
 0x20e   :  { %14 = sbr.rel (!%p12_p7) target bundleno = 2 (0x2), region = 87 }

</bundles_post_ra>
